<compile_context>
chip_gen: v6e
topology: v6e:2x2x1
jax: 0.10.0
libtpu: 0.0.40
codegen_flags: <defaults>
</compile_context>

<pallas_src>
import functools

import jax
import jax.numpy as jnp
import numpy as np
from jax import lax
from jax.experimental import pallas as pl
from jax.experimental.pallas import tpu as pltpu


def _round_up(x, m):
    return (x + m - 1) // m * m


def qrnn_kernel(x_ref, w_ref, b_ref, c0_ref, c_out_ref, h_out_ref,
                f_scr, iz_scr, o_scr, c_carry, *, unroll):
    # x_ref:   (T_blk, B_blk, KC_pad) bf16  time-major unfolded input block
    # w_ref:   (KC_pad, 3*H_pad)      bf16  fused [z | f | o] weight slab
    # b_ref:   (1, 3*H_pad)           f32   fused bias
    # c0_ref:  (B_blk, H_pad)         f32   initial cell state
    # c_out_ref / h_out_ref: (T_blk, B_blk, H_pad) time-major outputs
    # scratch: f/iz/o (T_blk, B_blk, H_pad) f32 ; c_carry (B_blk, H_pad) f32
    T_blk, B_blk, KC = x_ref.shape
    H = w_ref.shape[1] // 3          # H_pad (multiple of 128 -> lane-aligned slices)

    # First time tile of this batch block: load the initial state.
    @pl.when(pl.program_id(1) == 0)
    def _():
        c_carry[...] = c0_ref[...]

    # ---- fused Conv1d: ONE bf16 MXU matmul for all three gates ----
    x2d = x_ref[...].reshape(T_blk * B_blk, KC)        # bf16, sublane-aligned (B_blk=16)
    gates = jnp.dot(x2d, w_ref[...], preferred_element_type=jnp.float32)
    gates = gates + b_ref[...]                          # f32 bias
    z = jnp.tanh(gates[:, 0:H])
    f = jax.nn.sigmoid(gates[:, H:2 * H])
    o = jax.nn.sigmoid(gates[:, 2 * H:3 * H])

    # Bulk VPU passes hoisted out of the serial loop.
    f_scr[...] = f.reshape(T_blk, B_blk, H)
    iz_scr[...] = ((1.0 - f) * z).reshape(T_blk, B_blk, H)
    o_scr[...] = o.reshape(T_blk, B_blk, H)

    # ---- sequential fo-pooling: c = f*c + iz, outputs folded into the loop ----
    def body(t, c_prev):
        c_new = f_scr[t] * c_prev + iz_scr[t]           # (B_blk, H_pad) f32
        c_out_ref[t] = c_new.astype(c_out_ref.dtype)    # free vst slots on the
        h_out_ref[t] = (o_scr[t] * c_new).astype(h_out_ref.dtype)  # latency chain
        return c_new

    c_carry[...] = lax.fori_loop(0, T_blk, body, c_carry[...], unroll=unroll)


def _derive_time_block(T, B_blk, H_pad, KC_pad, out_bytes, budget_bytes):
    """Pick the largest time tile whose VMEM footprint fits the budget."""
    per_t = B_blk * (
        2 * 2 * KC_pad                 # x block, bf16, double-buffered
        + 2 * 2 * out_bytes * H_pad    # c / h outputs, double-buffered
        + 3 * 4 * H_pad                # f / iz / o f32 scratch
        + 6 * 4 * H_pad)               # headroom: f32 gate/activation intermediates
    fixed = (2 * 2 * KC_pad * 3 * H_pad   # weight slab, bf16, 2 bufs
             + 2 * 4 * 3 * H_pad          # bias, f32, 2 bufs
             + 3 * 4 * B_blk * H_pad)     # c0 (2 bufs) + c_carry
    t_fit = int((budget_bytes - fixed) // per_t) // 8 * 8
    t_fit = max(8, min(t_fit, 1024))
    return min(t_fit, _round_up(T, 8)), per_t, fixed


def qrnn_layer_forward(inputs, conv_w, conv_b, state=None, *,
                       batch_block=16, vmem_budget_bytes=40 * 2**20, unroll=8):
    """inputs: (B, C_in, T) NCL like PyTorch Conv1d. Returns (c, h), each (B, H, T)."""
    B, C_in, T = inputs.shape
    out3, _, K = conv_w.shape
    H = out3 // 3
    out_dtype = inputs.dtype
    compute_dtype = jnp.bfloat16       # bf16-native MXU on v5e/v6e/v7x

    B_blk = batch_block                # 16: bf16 sublane packing for the in-kernel reshape
    B_pad = _round_up(B, B_blk)
    H_pad = _round_up(H, 128)
    KC = K * C_in
    KC_pad = _round_up(KC, 128)
    out_bytes = jnp.dtype(out_dtype).itemsize

    T_blk, per_t, fixed = _derive_time_block(T, B_blk, H_pad, KC_pad, out_bytes,
                                             vmem_budget_bytes)
    T_pad = _round_up(T, T_blk)
    unroll = min(unroll, T_blk)
    vmem_limit = int(min(56 * 2**20,
                         max(fixed + per_t * T_blk + (8 * 2**20), 16 * 2**20)))

    # ---- layout glue: left pad (keep_len=True), unfold K taps, time-major ----
    # TODO(synk): the K-fold x duplication could be avoided with K shifted
    #             in-kernel matmuls over a single (T+K-1, B, C_in) slab; kept
    #             simple here (bf16 storage already halves unfolded traffic).
    x = jnp.transpose(inputs, (0, 2, 1)).astype(compute_dtype)   # (B, T, C_in)
    x = jnp.pad(x, ((0, 0), (K - 1, 0), (0, 0)))                 # (B, T+K-1, C_in)
    # unfold: x_unf[b, t, k*C_in + c] = x_padded[b, t + k, c]
    x_unf = jnp.concatenate([x[:, k:k + T, :] for k in range(K)], axis=-1)
    x_tm = jnp.transpose(x_unf, (1, 0, 2))                       # (T, B, K*C_in)
    x_tm = jnp.pad(x_tm, ((0, T_pad - T), (0, B_pad - B), (0, KC_pad - KC)))

    # weights: conv_w (3H, C_in, K) -> unfolded (K*C_in, 3H) -> fused padded slab
    w_unf = jnp.transpose(conv_w, (2, 1, 0)).reshape(KC, 3 * H)
    w_slab = jnp.zeros((KC_pad, 3 * H_pad), compute_dtype)
    b_slab = jnp.zeros((1, 3 * H_pad), jnp.float32)
    for g in range(3):
        w_slab = w_slab.at[:KC, g * H_pad:g * H_pad + H].set(
            w_unf[:, g * H:(g + 1) * H].astype(compute_dtype))
        b_slab = b_slab.at[0, g * H_pad:g * H_pad + H].set(
            conv_b[g * H:(g + 1) * H].astype(jnp.float32))

    # initial cell state kept in f32 end-to-end
    c0 = jnp.zeros((B_pad, H_pad), jnp.float32)
    if state is not None:
        c0 = c0.at[:B, :H].set(state.astype(jnp.float32))

    grid = (B_pad // B_blk, T_pad // T_blk)

    grid_spec = pltpu.PrefetchScalarGridSpec(
        num_scalar_prefetch=0,
        grid=grid,
        in_specs=[
            pl.BlockSpec((T_blk, B_blk, KC_pad), lambda b, t: (t, b, 0)),
            # TODO(synk): pipeline_mode=pl.Buffered(1) on the constant blocks
            #             below would recover one extra weight-slab of VMEM.
            pl.BlockSpec((KC_pad, 3 * H_pad), lambda b, t: (0, 0)),
            pl.BlockSpec((1, 3 * H_pad), lambda b, t: (0, 0)),
            pl.BlockSpec((B_blk, H_pad), lambda b, t: (b, 0)),
        ],
        out_specs=[
            pl.BlockSpec((T_blk, B_blk, H_pad), lambda b, t: (t, b, 0)),
            pl.BlockSpec((T_blk, B_blk, H_pad), lambda b, t: (t, b, 0)),
        ],
        scratch_shapes=[
            pltpu.VMEM((T_blk, B_blk, H_pad), jnp.float32),   # f
            pltpu.VMEM((T_blk, B_blk, H_pad), jnp.float32),   # iz = (1-f)*z
            pltpu.VMEM((T_blk, B_blk, H_pad), jnp.float32),   # o
            pltpu.VMEM((B_blk, H_pad), jnp.float32),          # c carry across T tiles
        ],
    )

    kernel = functools.partial(qrnn_kernel, unroll=unroll)

    c_tbh, h_tbh = pl.pallas_call(
        kernel,
        out_shape=(jax.ShapeDtypeStruct((T_pad, B_pad, H_pad), out_dtype),
                   jax.ShapeDtypeStruct((T_pad, B_pad, H_pad), out_dtype)),
        grid_spec=grid_spec,
        compiler_params=pltpu.CompilerParams(
            dimension_semantics=("parallel", "arbitrary"),
            vmem_limit_bytes=vmem_limit),
    )(x_tm, w_slab, b_slab, c0)

    # crop padding, back to the PyTorch module's (B, H, T) output layout
    # TODO(synk): drop these transposes if the consumer accepts (T, B, H).
    c = jnp.transpose(c_tbh[:T, :B, :H], (1, 2, 0))
    h = jnp.transpose(h_tbh[:T, :B, :H], (1, 2, 0))
    return c, h


def qrnn_reference(inputs, conv_w, conv_b, state=None):
    """Pure-JAX f32 reference mirroring the PyTorch module (default path)."""
    B, C_in, T = inputs.shape
    out3, _, K = conv_w.shape
    H = out3 // 3
    x = jnp.transpose(inputs, (0, 2, 1))
    x_pad = jnp.pad(x, ((0, 0), (K - 1, 0), (0, 0)))
    gates = jnp.zeros((B, T, 3 * H), jnp.float32)
    for k in range(K):
        gates = gates + jnp.einsum('btc,oc->bto', x_pad[:, k:k + T, :],
                                   conv_w[:, :, k])
    gates = gates + conv_b
    z = jnp.tanh(gates[..., :H])
    f = jax.nn.sigmoid(gates[..., H:2 * H])
    o = jax.nn.sigmoid(gates[..., 2 * H:])
    c0 = jnp.zeros((B, H), jnp.float32) if state is None else state.astype(jnp.float32)

    def step(c, zfo):
        zt, ft, ot = zfo
        c_ = ft * c + (1.0 - ft) * zt
        return c_, (c_, ot * c_)

    _, (cs, hs) = lax.scan(
        step, c0,
        (jnp.transpose(z, (1, 0, 2)),
         jnp.transpose(f, (1, 0, 2)),
         jnp.transpose(o, (1, 0, 2))))
    return jnp.transpose(cs, (1, 2, 0)), jnp.transpose(hs, (1, 2, 0))


if __name__ == "__main__":
    B, C_in, T = 2, 16, 8
    H, K = 32, 3

    key = jax.random.PRNGKey(0)
    k_x, k_w, k_b, k_s, k_cw, k_cb, k_rw, k_rb = jax.random.split(key, 8)

    inputs = jax.random.normal(k_x, (B, C_in, T), jnp.float32)

    # nn.Conv1d(input_size, 3*hidden_size, kernel_size) params
    bound = 1.0 / np.sqrt(C_in * K)
    conv_w = jax.random.uniform(k_w, (3 * H, C_in, K), jnp.float32, -bound, bound)
    conv_b = jax.random.uniform(k_b, (3 * H,), jnp.float32, -bound, bound)

    # Declared by the module but unused on the default forward path
    # (memory=None, use_attn=False); initialized for parity with __init__.
    lbound = 1.0 / np.sqrt(H)
    conv_lin_w = jax.random.uniform(k_cw, (3 * H, H), jnp.float32, -lbound, lbound)
    conv_lin_b = jax.random.uniform(k_cb, (3 * H,), jnp.float32, -lbound, lbound)
    rbound = 1.0 / np.sqrt(2 * H)
    rnn_lin_w = jax.random.uniform(k_rw, (H, 2 * H), jnp.float32, -rbound, rbound)
    rnn_lin_b = jax.random.uniform(k_rb, (H,), jnp.float32, -rbound, rbound)

    # bf16 gate matmuls vs f32 reference -> looser tolerance
    RTOL, ATOL = 2e-2, 2e-2

    # -- case 1: state=None --------------------------------------------------
    c_out, h_out = qrnn_layer_forward(inputs, conv_w, conv_b)
    jax.block_until_ready((c_out, h_out))
    c_ref, h_ref = qrnn_reference(inputs, conv_w, conv_b)
    assert c_out.shape == (B, H, T) and h_out.shape == (B, H, T)
    np.testing.assert_allclose(np.asarray(c_out), np.asarray(c_ref),
                               rtol=RTOL, atol=ATOL)
    np.testing.assert_allclose(np.asarray(h_out), np.asarray(h_ref),
                               rtol=RTOL, atol=ATOL)

    # -- case 2: with an initial state ---------------------------------------
    state = jax.random.normal(k_s, (B, H), jnp.float32)
    c_out2, h_out2 = qrnn_layer_forward(inputs, conv_w, conv_b, state=state)
    jax.block_until_ready((c_out2, h_out2))
    c_ref2, h_ref2 = qrnn_reference(inputs, conv_w, conv_b, state=state)
    np.testing.assert_allclose(np.asarray(c_out2), np.asarray(c_ref2),
                               rtol=RTOL, atol=ATOL)
    np.testing.assert_allclose(np.asarray(h_out2), np.asarray(h_ref2),
                               rtol=RTOL, atol=ATOL)

    print("KERNEL_OK")
</pallas_src>

<mosaic_0001>
module attributes {stable_mosaic.version = 11 : i64} {
  func.func @qrnn_kernel(%arg0: i32, %arg1: i32, %arg2: memref<8x16x128xbf16, #tpu.memory_space<vmem>>, %arg3: memref<128x384xbf16, #tpu.memory_space<vmem>>, %arg4: memref<1x384xf32, #tpu.memory_space<vmem>>, %arg5: memref<16x128xf32, #tpu.memory_space<vmem>>, %arg6: memref<8x16x128xf32, #tpu.memory_space<vmem>>, %arg7: memref<8x16x128xf32, #tpu.memory_space<vmem>>, %arg8: memref<8x16x128xf32, #tpu.memory_space<vmem>>, %arg9: memref<8x16x128xf32, #tpu.memory_space<vmem>>, %arg10: memref<8x16x128xf32, #tpu.memory_space<vmem>>, %arg11: memref<16x128xf32, #tpu.memory_space<vmem>>) attributes {dimension_semantics = [#tpu.dimension_semantics<parallel>, #tpu.dimension_semantics<arbitrary>], iteration_bounds = array<i64: 1, 1>, scalar_prefetch = 0 : i64, scratch_operands = 4 : i64, tpu.core_type = #tpu.core_type<tc>, window_params = [{transform_indices = @transform_0, window_bounds = array<i64: 8, 16, 128>}, {pipeline_mode = #tpu.pipeline_mode<synchronous>, transform_indices = @transform_1, window_bounds = array<i64: 128, 384>}, {pipeline_mode = #tpu.pipeline_mode<synchronous>, transform_indices = @transform_2, window_bounds = array<i64: 1, 384>}, {transform_indices = @transform_3, window_bounds = array<i64: 16, 128>}, {transform_indices = @transform_4, window_bounds = array<i64: 8, 16, 128>}, {transform_indices = @transform_5, window_bounds = array<i64: 8, 16, 128>}]} {
    %c0_i32 = arith.constant 0 : i32
    %0 = arith.cmpi eq, %arg1, %c0_i32 : i32
    %1 = arith.extui %0 : i1 to i32
    %c0_i32_0 = arith.constant 0 : i32
    %2 = arith.cmpi ne, %1, %c0_i32_0 : i32
    scf.if %2 {
      %c0_104 = arith.constant 0 : index
      %c0_105 = arith.constant 0 : index
      %195 = vector.load %arg5[%c0_104, %c0_105] : memref<16x128xf32, #tpu.memory_space<vmem>>, vector<16x128xf32>
      %c0_106 = arith.constant 0 : index
      %c0_107 = arith.constant 0 : index
      %196 = vector.load %arg11[%c0_106, %c0_107] : memref<16x128xf32, #tpu.memory_space<vmem>>, vector<16x128xf32>
      tpu.vector_store %arg11[%c0_106, %c0_107], %195 {strides = array<i32>} : memref<16x128xf32, #tpu.memory_space<vmem>>, vector<16x128xf32>,
    } else {
    }
    %c0 = arith.constant 0 : index
    %c0_1 = arith.constant 0 : index
    %c0_2 = arith.constant 0 : index
    %3 = vector.load %arg2[%c0, %c0_1, %c0_2] : memref<8x16x128xbf16, #tpu.memory_space<vmem>>, vector<8x16x128xbf16>
    %4 = vector.shape_cast %3 : vector<8x16x128xbf16> to vector<128x128xbf16>
    %c0_3 = arith.constant 0 : index
    %c0_4 = arith.constant 0 : index
    %5 = vector.load %arg3[%c0_3, %c0_4] : memref<128x384xbf16, #tpu.memory_space<vmem>>, vector<128x384xbf16>
    %cst = arith.constant dense<0.000000e+00> : vector<128x384xf32>
    %6 = tpu.matmul %4, %5, %cst {dimension_numbers = #tpu.dot_dimension_numbers<[1], [0], [0], [1], [0, 0, 1, 1], [], []>} : vector<128x128xbf16>, vector<128x384xbf16>, vector<128x384xf32> -> vector<128x384xf32>
    %c0_5 = arith.constant 0 : index
    %c0_6 = arith.constant 0 : index
    %7 = vector.load %arg4[%c0_5, %c0_6] : memref<1x384xf32, #tpu.memory_space<vmem>>, vector<1x384xf32>
    %8 = vector.broadcast %7 : vector<1x384xf32> to vector<128x384xf32>
    %9 = arith.addf %6, %8 : vector<128x384xf32>
    %10 = vector.extract_strided_slice %9 {offsets = [0, 0], sizes = [128, 128], strides = [1, 1]} : vector<128x384xf32> to vector<128x128xf32>
    %11 = math.tanh %10 : vector<128x128xf32>
    %12 = vector.extract_strided_slice %9 {offsets = [0, 128], sizes = [128, 128], strides = [1, 1]} : vector<128x384xf32> to vector<128x128xf32>
    %13 = arith.negf %12 : vector<128x128xf32>
    %14 = math.exp %13 : vector<128x128xf32>
    %cst_7 = arith.constant 1.000000e+00 : f32
    %15 = vector.broadcast %cst_7 : f32 to vector<128x128xf32>
    %16 = arith.addf %15, %14 : vector<128x128xf32>
    %17 = arith.divf %15, %16 : vector<128x128xf32>
    %18 = vector.extract_strided_slice %9 {offsets = [0, 256], sizes = [128, 128], strides = [1, 1]} : vector<128x384xf32> to vector<128x128xf32>
    %19 = arith.negf %18 : vector<128x128xf32>
    %20 = math.exp %19 : vector<128x128xf32>
    %cst_8 = arith.constant 1.000000e+00 : f32
    %21 = vector.broadcast %cst_8 : f32 to vector<128x128xf32>
    %22 = arith.addf %21, %20 : vector<128x128xf32>
    %23 = arith.divf %21, %22 : vector<128x128xf32>
    %24 = vector.shape_cast %17 : vector<128x128xf32> to vector<8x16x128xf32>
    %c0_9 = arith.constant 0 : index
    %c0_10 = arith.constant 0 : index
    %c0_11 = arith.constant 0 : index
    %25 = vector.load %arg8[%c0_9, %c0_10, %c0_11] : memref<8x16x128xf32, #tpu.memory_space<vmem>>, vector<8x16x128xf32>
    tpu.vector_store %arg8[%c0_9, %c0_10, %c0_11], %24 {strides = array<i32>} : memref<8x16x128xf32, #tpu.memory_space<vmem>>, vector<8x16x128xf32>,
    %cst_12 = arith.constant 1.000000e+00 : f32
    %26 = vector.broadcast %cst_12 : f32 to vector<128x128xf32>
    %27 = arith.subf %26, %17 : vector<128x128xf32>
    %28 = arith.mulf %27, %11 : vector<128x128xf32>
    %29 = vector.shape_cast %28 : vector<128x128xf32> to vector<8x16x128xf32>
    %c0_13 = arith.constant 0 : index
    %c0_14 = arith.constant 0 : index
    %c0_15 = arith.constant 0 : index
    %30 = vector.load %arg9[%c0_13, %c0_14, %c0_15] : memref<8x16x128xf32, #tpu.memory_space<vmem>>, vector<8x16x128xf32>
    tpu.vector_store %arg9[%c0_13, %c0_14, %c0_15], %29 {strides = array<i32>} : memref<8x16x128xf32, #tpu.memory_space<vmem>>, vector<8x16x128xf32>,
    %31 = vector.shape_cast %23 : vector<128x128xf32> to vector<8x16x128xf32>
    %c0_16 = arith.constant 0 : index
    %c0_17 = arith.constant 0 : index
    %c0_18 = arith.constant 0 : index
    %32 = vector.load %arg10[%c0_16, %c0_17, %c0_18] : memref<8x16x128xf32, #tpu.memory_space<vmem>>, vector<8x16x128xf32>
    tpu.vector_store %arg10[%c0_16, %c0_17, %c0_18], %31 {strides = array<i32>} : memref<8x16x128xf32, #tpu.memory_space<vmem>>, vector<8x16x128xf32>,
    %c0_19 = arith.constant 0 : index
    %c0_20 = arith.constant 0 : index
    %33 = vector.load %arg11[%c0_19, %c0_20] : memref<16x128xf32, #tpu.memory_space<vmem>>, vector<16x128xf32>
    %c0_i32_21 = arith.constant 0 : i32
    %34 = arith.index_cast %c0_i32_21 : i32 to index
    %c0_22 = arith.constant 0 : index
    %c0_23 = arith.constant 0 : index
    %35 = vector.load %arg8[%34, %c0_22, %c0_23] : memref<8x16x128xf32, #tpu.memory_space<vmem>>, vector<1x16x128xf32>
    %36 = vector.shape_cast %35 : vector<1x16x128xf32> to vector<16x128xf32>
    %37 = arith.mulf %36, %33 : vector<16x128xf32>
    %38 = arith.index_cast %c0_i32_21 : i32 to index
    %c0_24 = arith.constant 0 : index
    %c0_25 = arith.constant 0 : index
    %39 = vector.load %arg9[%38, %c0_24, %c0_25] : memref<8x16x128xf32, #tpu.memory_space<vmem>>, vector<1x16x128xf32>
    %40 = vector.shape_cast %39 : vector<1x16x128xf32> to vector<16x128xf32>
    %41 = arith.addf %37, %40 : vector<16x128xf32>
    %42 = arith.index_cast %c0_i32_21 : i32 to index
    %c0_26 = arith.constant 0 : index
    %c0_27 = arith.constant 0 : index
    %43 = vector.load %arg6[%42, %c0_26, %c0_27] : memref<8x16x128xf32, #tpu.memory_space<vmem>>, vector<1x16x128xf32>
    %44 = vector.shape_cast %43 : vector<1x16x128xf32> to vector<16x128xf32>
    %45 = vector.shape_cast %41 : vector<16x128xf32> to vector<1x16x128xf32>
    tpu.vector_store %arg6[%42, %c0_26, %c0_27], %45 {strides = array<i32>} : memref<8x16x128xf32, #tpu.memory_space<vmem>>, vector<1x16x128xf32>,
    %46 = arith.index_cast %c0_i32_21 : i32 to index
    %c0_28 = arith.constant 0 : index
    %c0_29 = arith.constant 0 : index
    %47 = vector.load %arg10[%46, %c0_28, %c0_29] : memref<8x16x128xf32, #tpu.memory_space<vmem>>, vector<1x16x128xf32>
    %48 = vector.shape_cast %47 : vector<1x16x128xf32> to vector<16x128xf32>
    %49 = arith.mulf %48, %41 : vector<16x128xf32>
    %50 = arith.index_cast %c0_i32_21 : i32 to index
    %c0_30 = arith.constant 0 : index
    %c0_31 = arith.constant 0 : index
    %51 = vector.load %arg7[%50, %c0_30, %c0_31] : memref<8x16x128xf32, #tpu.memory_space<vmem>>, vector<1x16x128xf32>
    %52 = vector.shape_cast %51 : vector<1x16x128xf32> to vector<16x128xf32>
    %53 = vector.shape_cast %49 : vector<16x128xf32> to vector<1x16x128xf32>
    tpu.vector_store %arg7[%50, %c0_30, %c0_31], %53 {strides = array<i32>} : memref<8x16x128xf32, #tpu.memory_space<vmem>>, vector<1x16x128xf32>,
    %c1_i32 = arith.constant 1 : i32
    %54 = arith.index_cast %c1_i32 : i32 to index
    %c0_32 = arith.constant 0 : index
    %c0_33 = arith.constant 0 : index
    %55 = vector.load %arg8[%54, %c0_32, %c0_33] : memref<8x16x128xf32, #tpu.memory_space<vmem>>, vector<1x16x128xf32>
    %56 = vector.shape_cast %55 : vector<1x16x128xf32> to vector<16x128xf32>
    %57 = arith.mulf %56, %41 : vector<16x128xf32>
    %58 = arith.index_cast %c1_i32 : i32 to index
    %c0_34 = arith.constant 0 : index
    %c0_35 = arith.constant 0 : index
    %59 = vector.load %arg9[%58, %c0_34, %c0_35] : memref<8x16x128xf32, #tpu.memory_space<vmem>>, vector<1x16x128xf32>
    %60 = vector.shape_cast %59 : vector<1x16x128xf32> to vector<16x128xf32>
    %61 = arith.addf %57, %60 : vector<16x128xf32>
    %62 = arith.index_cast %c1_i32 : i32 to index
    %c0_36 = arith.constant 0 : index
    %c0_37 = arith.constant 0 : index
    %63 = vector.load %arg6[%62, %c0_36, %c0_37] : memref<8x16x128xf32, #tpu.memory_space<vmem>>, vector<1x16x128xf32>
    %64 = vector.shape_cast %63 : vector<1x16x128xf32> to vector<16x128xf32>
    %65 = vector.shape_cast %61 : vector<16x128xf32> to vector<1x16x128xf32>
    tpu.vector_store %arg6[%62, %c0_36, %c0_37], %65 {strides = array<i32>} : memref<8x16x128xf32, #tpu.memory_space<vmem>>, vector<1x16x128xf32>,
    %66 = arith.index_cast %c1_i32 : i32 to index
    %c0_38 = arith.constant 0 : index
    %c0_39 = arith.constant 0 : index
    %67 = vector.load %arg10[%66, %c0_38, %c0_39] : memref<8x16x128xf32, #tpu.memory_space<vmem>>, vector<1x16x128xf32>
    %68 = vector.shape_cast %67 : vector<1x16x128xf32> to vector<16x128xf32>
    %69 = arith.mulf %68, %61 : vector<16x128xf32>
    %70 = arith.index_cast %c1_i32 : i32 to index
    %c0_40 = arith.constant 0 : index
    %c0_41 = arith.constant 0 : index
    %71 = vector.load %arg7[%70, %c0_40, %c0_41] : memref<8x16x128xf32, #tpu.memory_space<vmem>>, vector<1x16x128xf32>
    %72 = vector.shape_cast %71 : vector<1x16x128xf32> to vector<16x128xf32>
    %73 = vector.shape_cast %69 : vector<16x128xf32> to vector<1x16x128xf32>
    tpu.vector_store %arg7[%70, %c0_40, %c0_41], %73 {strides = array<i32>} : memref<8x16x128xf32, #tpu.memory_space<vmem>>, vector<1x16x128xf32>,
    %c2_i32 = arith.constant 2 : i32
    %74 = arith.index_cast %c2_i32 : i32 to index
    %c0_42 = arith.constant 0 : index
    %c0_43 = arith.constant 0 : index
    %75 = vector.load %arg8[%74, %c0_42, %c0_43] : memref<8x16x128xf32, #tpu.memory_space<vmem>>, vector<1x16x128xf32>
    %76 = vector.shape_cast %75 : vector<1x16x128xf32> to vector<16x128xf32>
    %77 = arith.mulf %76, %61 : vector<16x128xf32>
    %78 = arith.index_cast %c2_i32 : i32 to index
    %c0_44 = arith.constant 0 : index
    %c0_45 = arith.constant 0 : index
    %79 = vector.load %arg9[%78, %c0_44, %c0_45] : memref<8x16x128xf32, #tpu.memory_space<vmem>>, vector<1x16x128xf32>
    %80 = vector.shape_cast %79 : vector<1x16x128xf32> to vector<16x128xf32>
    %81 = arith.addf %77, %80 : vector<16x128xf32>
    %82 = arith.index_cast %c2_i32 : i32 to index
    %c0_46 = arith.constant 0 : index
    %c0_47 = arith.constant 0 : index
    %83 = vector.load %arg6[%82, %c0_46, %c0_47] : memref<8x16x128xf32, #tpu.memory_space<vmem>>, vector<1x16x128xf32>
    %84 = vector.shape_cast %83 : vector<1x16x128xf32> to vector<16x128xf32>
    %85 = vector.shape_cast %81 : vector<16x128xf32> to vector<1x16x128xf32>
    tpu.vector_store %arg6[%82, %c0_46, %c0_47], %85 {strides = array<i32>} : memref<8x16x128xf32, #tpu.memory_space<vmem>>, vector<1x16x128xf32>,
    %86 = arith.index_cast %c2_i32 : i32 to index
    %c0_48 = arith.constant 0 : index
    %c0_49 = arith.constant 0 : index
    %87 = vector.load %arg10[%86, %c0_48, %c0_49] : memref<8x16x128xf32, #tpu.memory_space<vmem>>, vector<1x16x128xf32>
    %88 = vector.shape_cast %87 : vector<1x16x128xf32> to vector<16x128xf32>
    %89 = arith.mulf %88, %81 : vector<16x128xf32>
    %90 = arith.index_cast %c2_i32 : i32 to index
    %c0_50 = arith.constant 0 : index
    %c0_51 = arith.constant 0 : index
    %91 = vector.load %arg7[%90, %c0_50, %c0_51] : memref<8x16x128xf32, #tpu.memory_space<vmem>>, vector<1x16x128xf32>
    %92 = vector.shape_cast %91 : vector<1x16x128xf32> to vector<16x128xf32>
    %93 = vector.shape_cast %89 : vector<16x128xf32> to vector<1x16x128xf32>
    tpu.vector_store %arg7[%90, %c0_50, %c0_51], %93 {strides = array<i32>} : memref<8x16x128xf32, #tpu.memory_space<vmem>>, vector<1x16x128xf32>,
    %c3_i32 = arith.constant 3 : i32
    %94 = arith.index_cast %c3_i32 : i32 to index
    %c0_52 = arith.constant 0 : index
    %c0_53 = arith.constant 0 : index
    %95 = vector.load %arg8[%94, %c0_52, %c0_53] : memref<8x16x128xf32, #tpu.memory_space<vmem>>, vector<1x16x128xf32>
    %96 = vector.shape_cast %95 : vector<1x16x128xf32> to vector<16x128xf32>
    %97 = arith.mulf %96, %81 : vector<16x128xf32>
    %98 = arith.index_cast %c3_i32 : i32 to index
    %c0_54 = arith.constant 0 : index
    %c0_55 = arith.constant 0 : index
    %99 = vector.load %arg9[%98, %c0_54, %c0_55] : memref<8x16x128xf32, #tpu.memory_space<vmem>>, vector<1x16x128xf32>
    %100 = vector.shape_cast %99 : vector<1x16x128xf32> to vector<16x128xf32>
    %101 = arith.addf %97, %100 : vector<16x128xf32>
    %102 = arith.index_cast %c3_i32 : i32 to index
    %c0_56 = arith.constant 0 : index
    %c0_57 = arith.constant 0 : index
    %103 = vector.load %arg6[%102, %c0_56, %c0_57] : memref<8x16x128xf32, #tpu.memory_space<vmem>>, vector<1x16x128xf32>
    %104 = vector.shape_cast %103 : vector<1x16x128xf32> to vector<16x128xf32>
    %105 = vector.shape_cast %101 : vector<16x128xf32> to vector<1x16x128xf32>
    tpu.vector_store %arg6[%102, %c0_56, %c0_57], %105 {strides = array<i32>} : memref<8x16x128xf32, #tpu.memory_space<vmem>>, vector<1x16x128xf32>,
    %106 = arith.index_cast %c3_i32 : i32 to index
    %c0_58 = arith.constant 0 : index
    %c0_59 = arith.constant 0 : index
    %107 = vector.load %arg10[%106, %c0_58, %c0_59] : memref<8x16x128xf32, #tpu.memory_space<vmem>>, vector<1x16x128xf32>
    %108 = vector.shape_cast %107 : vector<1x16x128xf32> to vector<16x128xf32>
    %109 = arith.mulf %108, %101 : vector<16x128xf32>
    %110 = arith.index_cast %c3_i32 : i32 to index
    %c0_60 = arith.constant 0 : index
    %c0_61 = arith.constant 0 : index
    %111 = vector.load %arg7[%110, %c0_60, %c0_61] : memref<8x16x128xf32, #tpu.memory_space<vmem>>, vector<1x16x128xf32>
    %112 = vector.shape_cast %111 : vector<1x16x128xf32> to vector<16x128xf32>
    %113 = vector.shape_cast %109 : vector<16x128xf32> to vector<1x16x128xf32>
    tpu.vector_store %arg7[%110, %c0_60, %c0_61], %113 {strides = array<i32>} : memref<8x16x128xf32, #tpu.memory_space<vmem>>, vector<1x16x128xf32>,
    %c4_i32 = arith.constant 4 : i32
    %114 = arith.index_cast %c4_i32 : i32 to index
    %c0_62 = arith.constant 0 : index
    %c0_63 = arith.constant 0 : index
    %115 = vector.load %arg8[%114, %c0_62, %c0_63] : memref<8x16x128xf32, #tpu.memory_space<vmem>>, vector<1x16x128xf32>
    %116 = vector.shape_cast %115 : vector<1x16x128xf32> to vector<16x128xf32>
    %117 = arith.mulf %116, %101 : vector<16x128xf32>
    %118 = arith.index_cast %c4_i32 : i32 to index
    %c0_64 = arith.constant 0 : index
    %c0_65 = arith.constant 0 : index
    %119 = vector.load %arg9[%118, %c0_64, %c0_65] : memref<8x16x128xf32, #tpu.memory_space<vmem>>, vector<1x16x128xf32>
    %120 = vector.shape_cast %119 : vector<1x16x128xf32> to vector<16x128xf32>
    %121 = arith.addf %117, %120 : vector<16x128xf32>
    %122 = arith.index_cast %c4_i32 : i32 to index
    %c0_66 = arith.constant 0 : index
    %c0_67 = arith.constant 0 : index
    %123 = vector.load %arg6[%122, %c0_66, %c0_67] : memref<8x16x128xf32, #tpu.memory_space<vmem>>, vector<1x16x128xf32>
    %124 = vector.shape_cast %123 : vector<1x16x128xf32> to vector<16x128xf32>
    %125 = vector.shape_cast %121 : vector<16x128xf32> to vector<1x16x128xf32>
    tpu.vector_store %arg6[%122, %c0_66, %c0_67], %125 {strides = array<i32>} : memref<8x16x128xf32, #tpu.memory_space<vmem>>, vector<1x16x128xf32>,
    %126 = arith.index_cast %c4_i32 : i32 to index
    %c0_68 = arith.constant 0 : index
    %c0_69 = arith.constant 0 : index
    %127 = vector.load %arg10[%126, %c0_68, %c0_69] : memref<8x16x128xf32, #tpu.memory_space<vmem>>, vector<1x16x128xf32>
    %128 = vector.shape_cast %127 : vector<1x16x128xf32> to vector<16x128xf32>
    %129 = arith.mulf %128, %121 : vector<16x128xf32>
    %130 = arith.index_cast %c4_i32 : i32 to index
    %c0_70 = arith.constant 0 : index
    %c0_71 = arith.constant 0 : index
    %131 = vector.load %arg7[%130, %c0_70, %c0_71] : memref<8x16x128xf32, #tpu.memory_space<vmem>>, vector<1x16x128xf32>
    %132 = vector.shape_cast %131 : vector<1x16x128xf32> to vector<16x128xf32>
    %133 = vector.shape_cast %129 : vector<16x128xf32> to vector<1x16x128xf32>
    tpu.vector_store %arg7[%130, %c0_70, %c0_71], %133 {strides = array<i32>} : memref<8x16x128xf32, #tpu.memory_space<vmem>>, vector<1x16x128xf32>,
    %c5_i32 = arith.constant 5 : i32
    %134 = arith.index_cast %c5_i32 : i32 to index
    %c0_72 = arith.constant 0 : index
    %c0_73 = arith.constant 0 : index
    %135 = vector.load %arg8[%134, %c0_72, %c0_73] : memref<8x16x128xf32, #tpu.memory_space<vmem>>, vector<1x16x128xf32>
    %136 = vector.shape_cast %135 : vector<1x16x128xf32> to vector<16x128xf32>
    %137 = arith.mulf %136, %121 : vector<16x128xf32>
    %138 = arith.index_cast %c5_i32 : i32 to index
    %c0_74 = arith.constant 0 : index
    %c0_75 = arith.constant 0 : index
    %139 = vector.load %arg9[%138, %c0_74, %c0_75] : memref<8x16x128xf32, #tpu.memory_space<vmem>>, vector<1x16x128xf32>
    %140 = vector.shape_cast %139 : vector<1x16x128xf32> to vector<16x128xf32>
    %141 = arith.addf %137, %140 : vector<16x128xf32>
    %142 = arith.index_cast %c5_i32 : i32 to index
    %c0_76 = arith.constant 0 : index
    %c0_77 = arith.constant 0 : index
    %143 = vector.load %arg6[%142, %c0_76, %c0_77] : memref<8x16x128xf32, #tpu.memory_space<vmem>>, vector<1x16x128xf32>
    %144 = vector.shape_cast %143 : vector<1x16x128xf32> to vector<16x128xf32>
    %145 = vector.shape_cast %141 : vector<16x128xf32> to vector<1x16x128xf32>
    tpu.vector_store %arg6[%142, %c0_76, %c0_77], %145 {strides = array<i32>} : memref<8x16x128xf32, #tpu.memory_space<vmem>>, vector<1x16x128xf32>,
    %146 = arith.index_cast %c5_i32 : i32 to index
    %c0_78 = arith.constant 0 : index
    %c0_79 = arith.constant 0 : index
    %147 = vector.load %arg10[%146, %c0_78, %c0_79] : memref<8x16x128xf32, #tpu.memory_space<vmem>>, vector<1x16x128xf32>
    %148 = vector.shape_cast %147 : vector<1x16x128xf32> to vector<16x128xf32>
    %149 = arith.mulf %148, %141 : vector<16x128xf32>
    %150 = arith.index_cast %c5_i32 : i32 to index
    %c0_80 = arith.constant 0 : index
    %c0_81 = arith.constant 0 : index
    %151 = vector.load %arg7[%150, %c0_80, %c0_81] : memref<8x16x128xf32, #tpu.memory_space<vmem>>, vector<1x16x128xf32>
    %152 = vector.shape_cast %151 : vector<1x16x128xf32> to vector<16x128xf32>
    %153 = vector.shape_cast %149 : vector<16x128xf32> to vector<1x16x128xf32>
    tpu.vector_store %arg7[%150, %c0_80, %c0_81], %153 {strides = array<i32>} : memref<8x16x128xf32, #tpu.memory_space<vmem>>, vector<1x16x128xf32>,
    %c6_i32 = arith.constant 6 : i32
    %154 = arith.index_cast %c6_i32 : i32 to index
    %c0_82 = arith.constant 0 : index
    %c0_83 = arith.constant 0 : index
    %155 = vector.load %arg8[%154, %c0_82, %c0_83] : memref<8x16x128xf32, #tpu.memory_space<vmem>>, vector<1x16x128xf32>
    %156 = vector.shape_cast %155 : vector<1x16x128xf32> to vector<16x128xf32>
    %157 = arith.mulf %156, %141 : vector<16x128xf32>
    %158 = arith.index_cast %c6_i32 : i32 to index
    %c0_84 = arith.constant 0 : index
    %c0_85 = arith.constant 0 : index
    %159 = vector.load %arg9[%158, %c0_84, %c0_85] : memref<8x16x128xf32, #tpu.memory_space<vmem>>, vector<1x16x128xf32>
    %160 = vector.shape_cast %159 : vector<1x16x128xf32> to vector<16x128xf32>
    %161 = arith.addf %157, %160 : vector<16x128xf32>
    %162 = arith.index_cast %c6_i32 : i32 to index
    %c0_86 = arith.constant 0 : index
    %c0_87 = arith.constant 0 : index
    %163 = vector.load %arg6[%162, %c0_86, %c0_87] : memref<8x16x128xf32, #tpu.memory_space<vmem>>, vector<1x16x128xf32>
    %164 = vector.shape_cast %163 : vector<1x16x128xf32> to vector<16x128xf32>
    %165 = vector.shape_cast %161 : vector<16x128xf32> to vector<1x16x128xf32>
    tpu.vector_store %arg6[%162, %c0_86, %c0_87], %165 {strides = array<i32>} : memref<8x16x128xf32, #tpu.memory_space<vmem>>, vector<1x16x128xf32>,
    %166 = arith.index_cast %c6_i32 : i32 to index
    %c0_88 = arith.constant 0 : index
    %c0_89 = arith.constant 0 : index
    %167 = vector.load %arg10[%166, %c0_88, %c0_89] : memref<8x16x128xf32, #tpu.memory_space<vmem>>, vector<1x16x128xf32>
    %168 = vector.shape_cast %167 : vector<1x16x128xf32> to vector<16x128xf32>
    %169 = arith.mulf %168, %161 : vector<16x128xf32>
    %170 = arith.index_cast %c6_i32 : i32 to index
    %c0_90 = arith.constant 0 : index
    %c0_91 = arith.constant 0 : index
    %171 = vector.load %arg7[%170, %c0_90, %c0_91] : memref<8x16x128xf32, #tpu.memory_space<vmem>>, vector<1x16x128xf32>
    %172 = vector.shape_cast %171 : vector<1x16x128xf32> to vector<16x128xf32>
    %173 = vector.shape_cast %169 : vector<16x128xf32> to vector<1x16x128xf32>
    tpu.vector_store %arg7[%170, %c0_90, %c0_91], %173 {strides = array<i32>} : memref<8x16x128xf32, #tpu.memory_space<vmem>>, vector<1x16x128xf32>,
    %c7_i32 = arith.constant 7 : i32
    %174 = arith.index_cast %c7_i32 : i32 to index
    %c0_92 = arith.constant 0 : index
    %c0_93 = arith.constant 0 : index
    %175 = vector.load %arg8[%174, %c0_92, %c0_93] : memref<8x16x128xf32, #tpu.memory_space<vmem>>, vector<1x16x128xf32>
    %176 = vector.shape_cast %175 : vector<1x16x128xf32> to vector<16x128xf32>
    %177 = arith.mulf %176, %161 : vector<16x128xf32>
    %178 = arith.index_cast %c7_i32 : i32 to index
    %c0_94 = arith.constant 0 : index
    %c0_95 = arith.constant 0 : index
    %179 = vector.load %arg9[%178, %c0_94, %c0_95] : memref<8x16x128xf32, #tpu.memory_space<vmem>>, vector<1x16x128xf32>
    %180 = vector.shape_cast %179 : vector<1x16x128xf32> to vector<16x128xf32>
    %181 = arith.addf %177, %180 : vector<16x128xf32>
    %182 = arith.index_cast %c7_i32 : i32 to index
    %c0_96 = arith.constant 0 : index
    %c0_97 = arith.constant 0 : index
    %183 = vector.load %arg6[%182, %c0_96, %c0_97] : memref<8x16x128xf32, #tpu.memory_space<vmem>>, vector<1x16x128xf32>
    %184 = vector.shape_cast %183 : vector<1x16x128xf32> to vector<16x128xf32>
    %185 = vector.shape_cast %181 : vector<16x128xf32> to vector<1x16x128xf32>
    tpu.vector_store %arg6[%182, %c0_96, %c0_97], %185 {strides = array<i32>} : memref<8x16x128xf32, #tpu.memory_space<vmem>>, vector<1x16x128xf32>,
    %186 = arith.index_cast %c7_i32 : i32 to index
    %c0_98 = arith.constant 0 : index
    %c0_99 = arith.constant 0 : index
    %187 = vector.load %arg10[%186, %c0_98, %c0_99] : memref<8x16x128xf32, #tpu.memory_space<vmem>>, vector<1x16x128xf32>
    %188 = vector.shape_cast %187 : vector<1x16x128xf32> to vector<16x128xf32>
    %189 = arith.mulf %188, %181 : vector<16x128xf32>
    %190 = arith.index_cast %c7_i32 : i32 to index
    %c0_100 = arith.constant 0 : index
    %c0_101 = arith.constant 0 : index
    %191 = vector.load %arg7[%190, %c0_100, %c0_101] : memref<8x16x128xf32, #tpu.memory_space<vmem>>, vector<1x16x128xf32>
    %192 = vector.shape_cast %191 : vector<1x16x128xf32> to vector<16x128xf32>
    %193 = vector.shape_cast %189 : vector<16x128xf32> to vector<1x16x128xf32>
    tpu.vector_store %arg7[%190, %c0_100, %c0_101], %193 {strides = array<i32>} : memref<8x16x128xf32, #tpu.memory_space<vmem>>, vector<1x16x128xf32>,
    %c8_i32 = arith.constant 8 : i32
    %c0_102 = arith.constant 0 : index
    %c0_103 = arith.constant 0 : index
    %194 = vector.load %arg11[%c0_102, %c0_103] : memref<16x128xf32, #tpu.memory_space<vmem>>, vector<16x128xf32>
    tpu.vector_store %arg11[%c0_102, %c0_103], %181 {strides = array<i32>} : memref<16x128xf32, #tpu.memory_space<vmem>>, vector<16x128xf32>,
    return
  }
  func.func @transform_0(%arg0: i32, %arg1: i32) -> (i32, i32, i32) {
    %c0_i32 = arith.constant 0 : i32
    %c0_i32_0 = arith.constant 0 : i32
    return %arg1, %arg0, %c0_i32 : i32, i32, i32
  }
  func.func @transform_1(%arg0: i32, %arg1: i32) -> (i32, i32) {
    %c0_i32 = arith.constant 0 : i32
    %c0_i32_0 = arith.constant 0 : i32
    %c0_i32_1 = arith.constant 0 : i32
    return %c0_i32, %c0_i32_0 : i32, i32
  }
  func.func @transform_2(%arg0: i32, %arg1: i32) -> (i32, i32) {
    %c0_i32 = arith.constant 0 : i32
    %c0_i32_0 = arith.constant 0 : i32
    %c0_i32_1 = arith.constant 0 : i32
    return %c0_i32, %c0_i32_0 : i32, i32
  }
  func.func @transform_3(%arg0: i32, %arg1: i32) -> (i32, i32) {
    %c0_i32 = arith.constant 0 : i32
    %c0_i32_0 = arith.constant 0 : i32
    return %arg0, %c0_i32 : i32, i32
  }
  func.func @transform_4(%arg0: i32, %arg1: i32) -> (i32, i32, i32) {
    %c0_i32 = arith.constant 0 : i32
    %c0_i32_0 = arith.constant 0 : i32
    return %arg1, %arg0, %c0_i32 : i32, i32, i32
  }
  func.func @transform_5(%arg0: i32, %arg1: i32) -> (i32, i32, i32) {
    %c0_i32 = arith.constant 0 : i32
    %c0_i32_0 = arith.constant 0 : i32
    return %arg1, %arg0, %c0_i32 : i32, i32, i32
  }
}

</mosaic_0001>

<bundles_post_ra>
// kernel: tpu_custom_call.1
= control target key start
LH: loop header
LB: loop body
LE: loop exit
PB: predicated region body
PF: predicated region fallthrough
CT: control target
= control target key end

     0   :  { %11 = vsyncpa [#allocation7], 0  ;;  %s1625_s0 = inlined_call_operand.hbm [shape: bf16[8,16,128], index: 0, kind: input, shape index: {}]   ;;  %s1626_s1 = inlined_call_operand.hbm [shape: bf16[128,384], index: 1, kind: input, shape index: {}]   ;;  %s1627_s2 = inlined_call_operand.vmem [shape: f32[1,384], index: 2, kind: input, shape index: {}]   ;;  %s1628_s3 = inlined_call_operand.hbm [shape: f32[16,128], index: 3, kind: input, shape index: {}]   ;;  %s1629_s4 = inlined_call_operand.hbm [shape: f32[8,16,128], index: 4, kind: output, shape index: {0}]   ;;  %s1630_s5 = inlined_call_operand.hbm [shape: f32[8,16,128], index: 5, kind: output, shape index: {1}]  }
   0x1   :  { %12 = vsyncpa [#allocation10], 0 }
   0x2   :  { %13 = vsyncpa [#allocation8], 0 }
   0x3   :  { %14 = vsyncpa [#allocation14], 0  ;;  %s1443_s18 = smov [#allocation9]  }
   0x4   :  { %s32_s19 = sshll.u32 %s1443_s18, 4  ;;  %s33_s19 = int_to_ptr.vmem [resolvable:$true] %s32_s19 }
   0x5   :  { %s1343_s20 = scalar_lea.vmem %s33_s19, 3072  ;;  %p1348_p1 = scmp.lt.s32.totalorder %s33_s19, %s33_s19 }
   0x6   :  { %p1344_p0 = scmp.ne.s32.totalorder %s33_s19, %s1343_s20  ;;  %p1349_p2 = scmp.lt.s32.totalorder %s1343_s20, %s1343_s20 }
   0x8   :  { %p1350_p3 = por %p1349_p2, %p1348_p1 }
   0xa   :  { %p1351_p4 = pnand %p1350_p3, %p1344_p0 }
   0xc   :  { %1354 = shalt.err (!%p1351_p4)
}
   0xd   :  { %s1444_s21 = smov 192   ;;  %s1445_s22 = smov 12  }
   0xe   :  { %38 = dma.hbm_to_vmem [thread:$0]  %s1626_s1, 3072, %s33_s19, [#allocation10], %s1444_s21, %s1444_s21, %s1445_s22  }
   0xf   :  { %s1446_s25 = smov [#allocation6]  }
  0x10   :  { %s20_s26 = sshll.u32 %s1446_s25, 4  ;;  %s21_s26 = int_to_ptr.vmem [resolvable:$true] %s20_s26 }
  0x11   :  { %s1363_s27 = scalar_lea.vmem %s21_s26, 1024  ;;  %p1368_p6 = scmp.lt.s32.totalorder %s21_s26, %s21_s26 }
  0x12   :  { %p1364_p5 = scmp.ne.s32.totalorder %s21_s26, %s1363_s27  ;;  %p1369_p7 = scmp.lt.s32.totalorder %s1363_s27, %s1363_s27 }
  0x14   :  { %p1370_p8 = por %p1369_p7, %p1368_p6 }
  0x16   :  { %p1371_p9 = pnand %p1370_p8, %p1364_p5 }
  0x18   :  { %1374 = shalt.err (!%p1371_p9)
}
  0x19   :  { %s1447_s28 = smov 64   ;;  %s1448_s29 = smov 4  }
  0x1a   :  { %26 = dma.hbm_to_vmem [thread:$0]  %s1625_s0, 1024, %s21_s26, [#allocation7], %s1447_s28, %s1447_s28, %s1448_s29  }
  0x1b   :  { %s1449_s7 = smov [#allocation11]  }
  0x1c   :  { %s46_s8 = sshll.u32 %s1449_s7, 4  ;;  %s47_s8 = int_to_ptr.vmem [resolvable:$true] %s46_s8 }
  0x1d   :  { %s1383_s1 = scalar_lea.vmem %s47_s8, 256  ;;  %p1388_p11 = scmp.lt.s32.totalorder %s47_s8, %s47_s8 }
  0x1e   :  { %p1384_p10 = scmp.ne.s32.totalorder %s47_s8, %s1383_s1  ;;  %p1389_p12 = scmp.lt.s32.totalorder %s1383_s1, %s1383_s1 }
  0x20   :  { %p1390_p13 = por %p1389_p12, %p1388_p11 }
  0x22   :  { %p1391_p0 = pnand %p1390_p13, %p1384_p10 }
  0x24   :  { %1394 = shalt.err (!%p1391_p0)
}
  0x25   :  { %s1450_s9 = smov 128   ;;  %s1451_s10 = smov 8  }
  0x26   :  { %52 = dma.hbm_to_vmem [thread:$0]  %s1628_s3, 256, %s47_s8, [#allocation10], %s1450_s9, %s1450_s9, %s1451_s10  }
  0x27   :  { %1435 = dma.done.wait [#allocation7], 1024  }
  0x28   :  { %1436 = vsyncadd [#allocation7], 4294966272 }
  0x29   :  { %1437 = dma.done.wait [#allocation10], 3328  }
  0x2a   :  { %1438 = vsyncadd [#allocation10], 4294963968  ;;  %v1452_v0 = vmov 0   ;;  %v1135_v1 = vld [vmem:[#allocation9 + $0xac] ss:$12 sps:$4 sm:$0xff]   ;;  %v1166_v18 = vld [vmem:[#allocation6] sm:$0xff]   ;;  %v121_v33 = vlaneseq }
  0x2b   :  { %344 = vmatprep.mubr.bf16.mxu0 %v1452_v0  ;;  %v1137_v2 = vld [vmem:[#allocation9 + $0xa8] ss:$12 sps:$4 sm:$0xff]   ;;  %312 = vmatprep.subr.bf16.mxu0 %v1135_v1  ;;  %v1140_v4 = vld [vmem:[#allocation9 + $0x90] ss:$12 sps:$4 sm:$0xff]   ;;  %v1145_v7 = vld [vmem:[#allocation9 + $0x98] ss:$12 sps:$4 sm:$0xff]  }
  0x2c   :  { %v1138_v3 = vld [vmem:[#allocation9 + $0x94] ss:$12 sps:$4 sm:$0xff]   ;;  %313 = vmatpush1.bf16.msra.mxu0 %v1137_v2  ;;  %v1141_v5 = vld [vmem:[#allocation9 + $0xb0] ss:$12 sps:$4 sm:$0xff]   ;;  %v1144_v8 = vld [vmem:[#allocation9 + $0x78] ss:$12 sps:$4 sm:$0xff]   ;;  %1107 = vmatprep.mubr.bf16.mxu1 %v1166_v18 }
  0x2d   :  { %314 = vmatprep.subr.bf16.mxu0 %v1138_v3  ;;  %v1142_v6 = vld [vmem:[#allocation9 + $0x7c] ss:$12 sps:$4 sm:$0xff]   ;;  %1091 = vmatprep.subr.bf16.mxu1 %v1141_v5  ;;  %v1146_v9 = vld [vmem:[#allocation9 + $0x64] ss:$12 sps:$4 sm:$0xff]   ;;  %v1149_v10 = vld [vmem:[#allocation9 + $0x80] ss:$12 sps:$4 sm:$0xff]  }
  0x2e   :  { %1092 = vmatpush3.bf16.msra.mxu1 %v1141_v5  ;;  %v1148_v11 = vld [vmem:[#allocation9 + $0x60] ss:$12 sps:$4 sm:$0xff]   ;;  %v1153_v12 = vld [vmem:[#allocation9 + $0x68] ss:$12 sps:$4 sm:$0xff]   ;;  %v1157_v15 = vld [vmem:[#allocation9 + $0x50] ss:$12 sps:$4 sm:$0xff]  }
  0x2f   :  { %1093 = vmatprep.subr.bf16.mxu1 %v1145_v7  ;;  %v1150_v13 = vld [vmem:[#allocation9 + $0x4c] ss:$12 sps:$4 sm:$0xff]   ;;  %v1152_v14 = vld [vmem:[#allocation9 + $0x48] ss:$12 sps:$4 sm:$0xff]   ;;  %v1156_v17 = vld [vmem:[#allocation9 + $0x30] ss:$12 sps:$4 sm:$0xff]  }
  0x30   :  { %315 = vmatpush1.bf16.msra.mxu0 %v1140_v4  ;;  %v1154_v16 = vld [vmem:[#allocation9 + $0x34] ss:$12 sps:$4 sm:$0xff]   ;;  %v1161_v19 = vld [vmem:[#allocation9 + $0x38] ss:$12 sps:$4 sm:$0xff]   ;;  %v1158_v20 = vld [vmem:[#allocation9 + $0x1c] ss:$12 sps:$4 sm:$0xff]  }
  0x31   :  { %316 = vmatprep.subr.bf16.mxu0 %v1142_v6  ;;  %v1160_v21 = vld [vmem:[#allocation9 + $0x18] ss:$12 sps:$4 sm:$0xff]   ;;  %v1165_v22 = vld [vmem:[#allocation9 + $0x20] ss:$12 sps:$4 sm:$0xff]   ;;  %v1167_v25 = vld [vmem:[#allocation9 + $0x8] ss:$12 sps:$4 sm:$0xff]  }
  0x32   :  { %1094 = vmatpush3.bf16.msra.mxu1 %v1145_v7  ;;  %v1162_v23 = vld [vmem:[#allocation9 + $0x4] ss:$12 sps:$4 sm:$0xff]   ;;  %v1164_v24 = vld [vmem:[#allocation9] ss:$12 sps:$4 sm:$0xff]   ;;  %v1170_v28 = vld [vmem:[#allocation6 + $0x18] sm:$0xff]   ;;  %v122_v34 = vshrl.u32 %v121_v33, 7 }
  0x33   :  { %1095 = vmatprep.subr.bf16.mxu1 %v1149_v10  ;;  %v1168_v26 = vld [vmem:[#allocation6 + $0x8] sm:$0xff]   ;;  %v1169_v27 = vld [vmem:[#allocation6 + $0x10] sm:$0xff]   ;;  %v1171_v29 = vld [vmem:[#allocation6 + $0x20] sm:$0xff]   ;;  %s1454_s14 = smov [#allocation13]  }
  0x34   :  { %317 = vmatpush1.bf16.msra.mxu0 %v1144_v8  ;;  %v1172_v30 = vld [vmem:[#allocation6 + $0x28] sm:$0xff]   ;;  %v1173_v31 = vld [vmem:[#allocation6 + $0x30] sm:$0xff]   ;;  %v1174_v32 = vld [vmem:[#allocation6 + $0x38] sm:$0xff]   ;;  %v127_v35 = vsub.s32 1, %v122_v34  ;;  %v131_v37 = vsub.s32 2, %v122_v34  ;;  %v123_v39 = vsub.s32 0, %v122_v34 }
  0x35   :  { %318 = vmatprep.subr.bf16.mxu0 %v1146_v9  ;;  %v119_v36 = vld [vmem:[%s1627_s2] sm:$0x7]  ;;  %s1453_s2 = smov [#allocation12]   ;;  %s994_s15 = sshll.u32 %s1454_s14, 4  ;;  %s995_s15 = int_to_ptr.vmem [resolvable:$true] %s994_s15 }
  0x36   :  { %1096 = vmatpush3.bf16.msra.mxu1 %v1149_v10  ;;  %v1508_v38 = vrot.slane %v119_v36, %v127_v35  ;;  %v1510_v42 = vrot.slane %v119_v36, %v131_v37  ;;  %v1513_v45 = vrot.slane %v119_v36, %v123_v39  ;;  %s982_s13 = sshll.u32 %s1453_s2, 4  ;;  %s983_s13 = int_to_ptr.vmem [resolvable:$true] %s982_s13 }
  0x37   :  { %1097 = vmatprep.subr.bf16.mxu1 %v1153_v12  ;;  %s1395_s16 = scalar_lea.vmem %s983_s13, 2048  ;;  %p1400_p2 = scmp.lt.s32.totalorder %s983_s13, %s983_s13 }
  0x38   :  { %319 = vmatpush1.bf16.msra.mxu0 %v1148_v11  ;;  %p1396_p1 = scmp.ne.s32.totalorder %s983_s13, %s1395_s16  ;;  %p1401_p3 = scmp.lt.s32.totalorder %s1395_s16, %s1395_s16 }
  0x39   :  { %320 = vmatprep.subr.bf16.mxu0 %v1150_v13 }
  0x3a   :  { %1098 = vmatpush3.bf16.msra.mxu1 %v1153_v12  ;;  %p1402_p4 = por %p1401_p3, %p1400_p2 }
  0x3b   :  { %1099 = vmatprep.subr.bf16.mxu1 %v1157_v15 }
  0x3c   :  { %321 = vmatpush1.bf16.msra.mxu0 %v1152_v14  ;;  %p1403_p5 = pnand %p1402_p4, %p1396_p1 }
  0x3d   :  { %322 = vmatprep.subr.bf16.mxu0 %v1154_v16 }
  0x3e   :  { %1100 = vmatpush3.bf16.msra.mxu1 %v1157_v15 }
  0x3f   :  { %1101 = vmatprep.subr.bf16.mxu1 %v1161_v19 }
  0x40   :  { %323 = vmatpush1.bf16.msra.mxu0 %v1156_v17 }
  0x41   :  { %324 = vmatprep.subr.bf16.mxu0 %v1158_v20 }
  0x42   :  { %1102 = vmatpush3.bf16.msra.mxu1 %v1161_v19 }
  0x43   :  { %1103 = vmatprep.subr.bf16.mxu1 %v1165_v22 }
  0x44   :  { %325 = vmatpush1.bf16.msra.mxu0 %v1160_v21 }
  0x45   :  { %326 = vmatprep.subr.bf16.mxu0 %v1162_v23 }
  0x46   :  { %1104 = vmatpush3.bf16.msra.mxu1 %v1165_v22 }
  0x47   :  { %1105 = vmatprep.subr.bf16.mxu1 %v1167_v25 }
  0x48   :  { %327 = vmatpush1.bf16.msra.mxu0 %v1164_v24 }
  0x4a   :  { %1106 = vmatpush3.bf16.msra.mxu1 %v1167_v25 }
  0x4b   :  { %345 = vmatmul.mubr.bf16.vlgmr.msra.gmra.mxu0 %v1166_v18 }
  0x4c   :  { %354 = vmatprep.mubr.bf16.mxu0 %v1452_v0 }
  0x4d   :  { %1108 = vmatmul.mubr.bf16.vlgmr.msra.gmra.mxu1 %v1168_v26 }
  0x4e   :  { %1111 = vmatprep.mubr.bf16.mxu1 %v1169_v27 }
  0x53   :  { %355 = vmatmul.mubr.bf16.gmra.mxu0 %v1168_v26 }
  0x54   :  { %364 = vmatprep.mubr.bf16.mxu0 %v1452_v0 }
  0x55   :  { %1112 = vmatmul.mubr.bf16.gmra.mxu1 %v1170_v28 }
  0x56   :  { %1115 = vmatprep.mubr.bf16.mxu1 %v1171_v29 }
  0x5b   :  { %365 = vmatmul.mubr.bf16.gmra.mxu0 %v1169_v27 }
  0x5c   :  { %374 = vmatprep.mubr.bf16.mxu0 %v1452_v0 }
  0x5d   :  { %1116 = vmatmul.mubr.bf16.gmra.mxu1 %v1172_v30 }
  0x5e   :  { %1119 = vmatprep.mubr.bf16.mxu1 %v1173_v31 }
  0x63   :  { %375 = vmatmul.mubr.bf16.gmra.mxu0 %v1170_v28 }
  0x64   :  { %384 = vmatprep.mubr.bf16.mxu0 %v1452_v0 }
  0x65   :  { %1120 = vmatmul.mubr.bf16.gmra.mxu1 %v1174_v32 }
  0x6b   :  { %385 = vmatmul.mubr.bf16.gmra.mxu0 %v1171_v29 }
  0x6c   :  { %394 = vmatprep.mubr.bf16.mxu0 %v1452_v0 }
  0x73   :  { %395 = vmatmul.mubr.bf16.gmra.mxu0 %v1172_v30 }
  0x74   :  { %404 = vmatprep.mubr.bf16.mxu0 %v1452_v0 }
  0x7b   :  { %405 = vmatmul.mubr.bf16.gmra.mxu0 %v1173_v31 }
  0x7c   :  { %414 = vmatprep.mubr.bf16.mxu0 %v1452_v0 }
  0x83   :  { %415 = vmatmul.mubr.bf16.gmra.mxu0 %v1174_v32 }
 0x10b   :  { %v346_v40 = vpop.f32.mrf.mxu0 }
 0x10c   :  { %v347_v55 = vadd.f32 %v346_v40, %v1513_v45 }
 0x10d   :  { %v348_v41 = vpop.f32.mrf.mxu0  ;;  %v1109_v44 = vpop.f32.mrf.mxu1 }
 0x10e   :  { %v349_v43 = vadd.f32 %v348_v41, %v1508_v38  ;;  %v468_v47 = vadd.f32 %v1109_v44, %v1510_v42 }
 0x10f   :  { %v350_v46 = vpop.f32.mrf.mxu0  ;;  %v459_v49 = vpop.f32.mrf.mxu1 }
 0x110   :  { %v1043_v48 = vmul.f32 -1.442695, %v349_v43  ;;  %v1061_v51 = vmul.f32 -1.442695, %v468_v47  ;;  %v460_v52 = vadd.f32 %v459_v49, %v1510_v42  ;;  %v351_v2 = vadd.f32 %v350_v46, %v1513_v45 }
 0x111   :  { %v352_v50 = vpop.f32.mrf.mxu0  ;;  %v1110_v54 = vpop.f32.mrf.mxu1 }
 0x112   :  { %1175 = vpow2.f32 %v1043_v48  ;;  %v353_v53 = vadd.f32 %v352_v50, %v1508_v38  ;;  %v1059_v57 = vmul.f32 -1.442695, %v460_v52  ;;  %v471_v58 = vadd.f32 %v1110_v54, %v1510_v42 }
 0x113   :  { %v356_v56 = vpop.f32.mrf.mxu0  ;;  %1177 = vpow2.f32 %v1061_v51  ;;  %v462_v60 = vpop.f32.mrf.mxu1 }
 0x114   :  { %v1044_v59 = vmul.f32 -1.442695, %v353_v53  ;;  %1179 = vpow2.f32 %v1059_v57  ;;  %v1062_v62 = vmul.f32 -1.442695, %v471_v58  ;;  %v463_v63 = vadd.f32 %v462_v60, %v1510_v42 }
 0x115   :  { %v358_v61 = vpop.f32.mrf.mxu0  ;;  %v1113_v1 = vpop.f32.mrf.mxu1  ;;  %v357_v13 = vadd.f32 %v356_v56, %v1513_v45 }
 0x116   :  { %1181 = vpow2.f32 %v1044_v59  ;;  %v359_v0 = vadd.f32 %v358_v61, %v1508_v38  ;;  %v1060_v4 = vmul.f32 -1.442695, %v463_v63  ;;  %v484_v5 = vadd.f32 %v1113_v1, %v1510_v42 }
 0x117   :  { %1183 = vtanh.f32 %v347_v55  ;;  %v360_v3 = vpop.f32.mrf.mxu0  ;;  %v475_v7 = vpop.f32.mrf.mxu1 }
 0x118   :  { %v1045_v6 = vmul.f32 -1.442695, %v359_v0  ;;  %1185 = vpow2.f32 %v1062_v62  ;;  %v1065_v9 = vmul.f32 -1.442695, %v484_v5  ;;  %v476_v10 = vadd.f32 %v475_v7, %v1510_v42 }
 0x119   :  { %1187 = vpow2.f32 %v1060_v4  ;;  %v362_v8 = vpop.f32.mrf.mxu0  ;;  %v1114_v12 = vpop.f32.mrf.mxu1  ;;  %v361_v19 = vadd.f32 %v360_v3, %v1513_v45 }
 0x11a   :  { %1189 = vpow2.f32 %v1045_v6  ;;  %v363_v11 = vadd.f32 %v362_v8, %v1508_v38  ;;  %v1063_v15 = vmul.f32 -1.442695, %v476_v10  ;;  %v487_v16 = vadd.f32 %v1114_v12, %v1510_v42 }
 0x11b   :  { %1191 = vtanh.f32 %v351_v2  ;;  %v366_v14 = vpop.f32.mrf.mxu0  ;;  %v478_v18 = vpop.f32.mrf.mxu1 }
 0x11c   :  { %v1046_v17 = vmul.f32 -1.442695, %v363_v11  ;;  %1193 = vpow2.f32 %v1065_v9  ;;  %v1066_v21 = vmul.f32 -1.442695, %v487_v16  ;;  %v479_v25 = vadd.f32 %v478_v18, %v1510_v42  ;;  %v67_v9 = vld [vmem:[#allocation11] sm:$0xff] }
 0x11d   :  { %v368_v20 = vpop.f32.mrf.mxu0  ;;  %1195 = vpow2.f32 %v1063_v15  ;;  %v367_v27 = vadd.f32 %v366_v14, %v1513_v45  ;;  %v1117_v58 = vpop.f32.mrf.mxu1 }
 0x11e   :  { %1197 = vpow2.f32 %v1046_v17  ;;  %v369_v22 = vadd.f32 %v368_v20, %v1508_v38  ;;  %v1064_v36 = vmul.f32 -1.442695, %v479_v25 }
 0x11f   :  { %v1176_v23 = vpop.eup %1175  ;;  %1199 = vtanh.f32 %v357_v13  ;;  %v370_v24 = vpop.f32.mrf.mxu0 }
 0x120   :  { %v586_v26 = vadd.f32 1.0, %v1176_v23  ;;  %v1047_v28 = vmul.f32 -1.442695, %v369_v22  ;;  %1201 = vpow2.f32 %v1066_v21  ;;  %v1178_v29 = vpop.eup %1177  ;;  %v371_v52 = vadd.f32 %v370_v24, %v1513_v45  ;;  %v491_v7 = vpop.f32.mrf.mxu1 }
 0x121   :  { %1203 = vtanh.f32 %v361_v19  ;;  %v372_v30 = vpop.f32.mrf.mxu0  ;;  %v1180_v31 = vpop.eup %1179  ;;  %v684_v40 = vadd.f32 1.0, %v1178_v29  ;;  %v500_v19 = vadd.f32 %v1117_v58, %v1510_v42  ;;  %v492_v29 = vadd.f32 %v491_v7, %v1510_v42 }
 0x122   :  { %1205 = vrcp.f32 %v586_v26  ;;  %v682_v33 = vadd.f32 1.0, %v1180_v31  ;;  %v373_v34 = vadd.f32 %v372_v30, %v1508_v38  ;;  %v1118_v24 = vpop.f32.mrf.mxu1  ;;  %v68_v26 = vld [vmem:[#allocation11 + $0x8] sm:$0xff] }
 0x123   :  { %v1182_v32 = vpop.eup %1181  ;;  %1207 = vpow2.f32 %v1047_v28  ;;  %v376_v35 = vpop.f32.mrf.mxu0 }
 0x124   :  { %v1184_v37 = vpop.eup %1183  ;;  %v587_v39 = vadd.f32 1.0, %v1182_v32  ;;  %1209 = vtanh.f32 %v367_v27  ;;  %v1048_v48 = vmul.f32 -1.442695, %v373_v34  ;;  %v377_v2 = vadd.f32 %v376_v35, %v1513_v45 }
 0x125   :  { %v1186_v41 = vpop.eup %1185  ;;  %1211 = vrcp.f32 %v682_v33  ;;  %v378_v43 = vpop.f32.mrf.mxu0 }
 0x126   :  { %v1188_v44 = vpop.eup %1187  ;;  %1213 = vrcp.f32 %v587_v39  ;;  %v379_v53 = vadd.f32 %v378_v43, %v1508_v38  ;;  %v685_v55 = vadd.f32 1.0, %v1186_v41 }
 0x127   :  { %v1190_v46 = vpop.eup %1189  ;;  %v683_v47 = vadd.f32 1.0, %v1188_v44  ;;  %v380_v49 = vpop.f32.mrf.mxu0  ;;  %1215 = vpow2.f32 %v1064_v36  ;;  %v1069_v36 = vmul.f32 -1.442695, %v500_v19 }
 0x128   :  { %v1533_v50 = vpop.eup %1191  ;;  %1217 = vrcp.f32 %v684_v40  ;;  %v588_v51 = vadd.f32 1.0, %v1190_v46  ;;  %v1049_v0 = vmul.f32 -1.442695, %v379_v53  ;;  %v381_v33 = vadd.f32 %v380_v49, %v1513_v45  ;;  %v494_v46 = vpop.f32.mrf.mxu1 }
 0x129   :  { %v1194_v54 = vpop.eup %1193  ;;  %1219 = vrcp.f32 %v683_v47  ;;  %v382_v56 = vpop.f32.mrf.mxu0  ;;  %v495_v58 = vadd.f32 %v494_v46, %v1510_v42 }
 0x12a   :  { %v1196_v57 = vpop.eup %1195  ;;  %1221 = vrcp.f32 %v588_v51  ;;  %v688_v60 = vadd.f32 1.0, %v1194_v54  ;;  %v383_v3 = vadd.f32 %v382_v56, %v1508_v38  ;;  %v503_v51 = vadd.f32 %v1118_v24, %v1510_v42 }
 0x12b   :  { %v1198_v59 = vpop.eup %1197  ;;  %1223 = vpow2.f32 %v1048_v48  ;;  %v1537_v61 = vpop.f32.mrf.mxu0  ;;  %v686_v6 = vadd.f32 1.0, %v1196_v57  ;;  %v1067_v48 = vmul.f32 -1.442695, %v492_v29 }
 0x12c   :  { %v1539_v62 = vpop.eup %1199  ;;  %v589_v63 = vadd.f32 1.0, %v1198_v59  ;;  %1225 = vtanh.f32 %v371_v52  ;;  %v1050_v17 = vmul.f32 -1.442695, %v383_v3  ;;  %v387_v3 = vadd.f32 %v1537_v61, %v1513_v45 }
 0x12d   :  { %v1202_v1 = vpop.eup %1201  ;;  %1227 = vrcp.f32 %v685_v55  ;;  %v388_v4 = vpop.f32.mrf.mxu0 }
 0x12e   :  { %v1543_v5 = vpop.eup %1203  ;;  %1229 = vrcp.f32 %v589_v63  ;;  %v389_v10 = vadd.f32 %v388_v4, %v1508_v38  ;;  %v689_v14 = vadd.f32 1.0, %v1202_v1 }
 0x12f   :  { %v1206_v8 = vpop.eup %1205  ;;  %1231 = vrcp.f32 %v688_v60  ;;  %v1546_v11 = vpop.f32.mrf.mxu0 }
 0x130   :  { %v1208_v12 = vpop.eup %1207  ;;  %v746_v13 = vsub.f32 1.0, %v1206_v8  ;;  %1233 = vpow2.f32 %v1049_v0  ;;  %v814_v22 = vmul.f32 %v1206_v8, %v67_v9  ;;  %v1051_v27 = vmul.f32 -1.442695, %v389_v10 }
 0x131   :  { %v1548_v15 = vpop.eup %1209  ;;  %v590_v16 = vadd.f32 1.0, %v1208_v12  ;;  %1235 = vtanh.f32 %v377_v2  ;;  %v392_v18 = vpop.f32.mrf.mxu0  ;;  %v1070_v12 = vmul.f32 -1.442695, %v503_v51 }
 0x132   :  { %v1212_v20 = vpop.eup %1211  ;;  %v762_v21 = vmul.f32 %v1184_v37, %v746_v13  ;;  %1237 = vrcp.f32 %v686_v6  ;;  %v393_v23 = vadd.f32 %v392_v18, %v1508_v38  ;;  %v1068_v13 = vmul.f32 -1.442695, %v495_v58 }
 0x133   :  { %v1214_v25 = vpop.eup %1213  ;;  %1239 = vrcp.f32 %v590_v16  ;;  %v1552_v28 = vpop.f32.mrf.mxu0 }
 0x134   :  { %v1216_v30 = vpop.eup %1215  ;;  %v818_v31 = vadd.f32 %v814_v22, %v762_v21  ;;  %v747_v32 = vsub.f32 1.0, %v1214_v25  ;;  %1241 = vrcp.f32 %v689_v14  ;;  %v1052_v35 = vmul.f32 -1.442695, %v393_v23 }
 0x135   :  { %v1218_v34 = vpop.eup %1217  ;;  %1243 = vpow2.f32 %v1050_v17  ;;  %v398_v37 = vpop.f32.mrf.mxu0  ;;  %v815_v41 = vmul.f32 %v1214_v25, %v68_v26  ;;  %v687_v55 = vadd.f32 1.0, %v1216_v30  ;;  %v391_v25 = vadd.f32 %v1546_v11, %v1513_v45 }
 0x136   :  { %v1220_v39 = vpop.eup %1219  ;;  %820 = vst [vmem:[#allocation12] sm:$0xff] %v818_v31  ;;  %v763_v40 = vmul.f32 %v1533_v50, %v747_v32  ;;  %v824_v43 = vmul.f32 %v1212_v20, %v818_v31  ;;  %v399_v44 = vadd.f32 %v398_v37, %v1508_v38  ;;  %1245 = vpow2.f32 %v1051_v27  ;;  %v1121_v26 = vpop.f32.mrf.mxu1 }
 0x137   :  { %v1222_v47 = vpop.eup %1221  ;;  %v1559_v49 = vpop.f32.mrf.mxu0  ;;  %1247 = vtanh.f32 %v381_v33 }
 0x138   :  { %v1224_v52 = vpop.eup %1223  ;;  %v819_v53 = vadd.f32 %v815_v41, %v763_v40  ;;  %826 = vst [vmem:[#allocation13] sm:$0xff] %v824_v43  ;;  %v748_v54 = vsub.f32 1.0, %v1222_v47  ;;  %v831_v50 = vmul.f32 %v1222_v47, %v818_v31  ;;  %1249 = vpow2.f32 %v1052_v35  ;;  %v507_v40 = vpop.f32.mrf.mxu1 }
 0x139   :  { %v1561_v56 = vpop.eup %1225  ;;  %v591_v57 = vadd.f32 1.0, %v1224_v52  ;;  %v402_v59 = vpop.f32.mrf.mxu0  ;;  %1251 = vpow2.f32 %v1069_v36  ;;  %v1053_v1 = vmul.f32 -1.442695, %v399_v44 }
 0x13a   :  { %v1228_v60 = vpop.eup %1227  ;;  %821 = vst [vmem:[#allocation12 + $0x8] sm:$0xff] %v819_v53  ;;  %v764_v63 = vmul.f32 %v1539_v62, %v748_v54  ;;  %v825_v0 = vmul.f32 %v1220_v39, %v819_v53  ;;  %v403_v4 = vadd.f32 %v402_v59, %v1508_v38  ;;  %v397_v39 = vadd.f32 %v1552_v28, %v1513_v45 }
 0x13b   :  { %v1230_v2 = vpop.eup %1229  ;;  %1253 = vrcp.f32 %v591_v57  ;;  %v1568_v6 = vpop.f32.mrf.mxu0 }
 0x13c   :  { %v1570_v7 = vpop.eup %1231  ;;  %v836_v8 = vadd.f32 %v831_v50, %v764_v63  ;;  %827 = vst [vmem:[#allocation13 + $0x8] sm:$0xff] %v825_v0  ;;  %v749_v9 = vsub.f32 1.0, %v1230_v2  ;;  %1255 = vrcp.f32 %v687_v55  ;;  %v832_v62 = vmul.f32 %v1230_v2, %v819_v53  ;;  %v1122_v50 = vpop.f32.mrf.mxu1 }
 0x13d   :  { %v1234_v10 = vpop.eup %1233  ;;  %1257 = vpow2.f32 %v1067_v48  ;;  %v408_v14 = vpop.f32.mrf.mxu0  ;;  %v1054_v20 = vmul.f32 -1.442695, %v403_v4  ;;  %v407_v28 = vadd.f32 %v1568_v6, %v1513_v45  ;;  %v516_v55 = vadd.f32 %v1121_v26, %v1510_v42 }
 0x13e   :  { %v1572_v16 = vpop.eup %1235  ;;  %839 = vst [vmem:[#allocation12 + $0x10] sm:$0xff] %v836_v8  ;;  %v844_v61 = vmul.f32 %v1218_v34, %v836_v8  ;;  %v765_v17 = vmul.f32 %v1543_v5, %v749_v9  ;;  %v592_v18 = vadd.f32 1.0, %v1234_v10  ;;  %1259 = vpow2.f32 %v1053_v1  ;;  %v510_v10 = vpop.f32.mrf.mxu1 }
 0x13f   :  { %v1238_v19 = vpop.eup %1237  ;;  %1261 = vtanh.f32 %v387_v3  ;;  %v409_v21 = vadd.f32 %v408_v14, %v1508_v38  ;;  %v1576_v22 = vpop.f32.mrf.mxu0  ;;  %v1073_v9 = vmul.f32 -1.442695, %v516_v55 }
 0x140   :  { %v1240_v23 = vpop.eup %1239  ;;  %847 = vst [vmem:[#allocation13 + $0x10] sm:$0xff] %v844_v61  ;;  %v837_v24 = vadd.f32 %v832_v62, %v765_v17  ;;  %1263 = vrcp.f32 %v592_v18 }
 0x141   :  { %v1580_v27 = vpop.eup %1241  ;;  %v750_v5 = vsub.f32 1.0, %v1240_v23  ;;  %1265 = vpow2.f32 %v1070_v12  ;;  %v412_v29 = vpop.f32.mrf.mxu0  ;;  %v852_v32 = vmul.f32 %v1240_v23, %v836_v8  ;;  %v1055_v33 = vmul.f32 -1.442695, %v409_v21 }
 0x142   :  { %v1244_v30 = vpop.eup %1243  ;;  %840 = vst [vmem:[#allocation12 + $0x18] sm:$0xff] %v837_v24  ;;  %v845_v31 = vmul.f32 %v1228_v60, %v837_v24  ;;  %1267 = vpow2.f32 %v1068_v13  ;;  %v413_v36 = vadd.f32 %v412_v29, %v1508_v38 }
 0x143   :  { %v766_v34 = vmul.f32 %v1548_v15, %v750_v5  ;;  %v593_v35 = vadd.f32 1.0, %v1244_v30  ;;  %1269 = vpow2.f32 %v1054_v20  ;;  %v1584_v37 = vpop.f32.mrf.mxu0  ;;  %v1246_v11 = vpop.eup %1245  ;;  %v401_v15 = vadd.f32 %v1559_v49, %v1513_v45 }
 0x144   :  { %848 = vst [vmem:[#allocation13 + $0x18] sm:$0xff] %v845_v31  ;;  %1271 = vtanh.f32 %v391_v25  ;;  %v1588_v41 = vpop.eup %1247  ;;  %v594_v44 = vadd.f32 1.0, %v1246_v11  ;;  %v1056_v52 = vmul.f32 -1.442695, %v413_v36  ;;  %v508_v49 = vadd.f32 %v507_v40, %v1510_v42 }
 0x145   :  { %v857_v43 = vadd.f32 %v852_v32, %v766_v34  ;;  %1273 = vrcp.f32 %v593_v35  ;;  %v1250_v46 = vpop.eup %1249  ;;  %v418_v53 = vpop.f32.mrf.mxu0  ;;  %v519_v32 = vadd.f32 %v1122_v50, %v1510_v42 }
 0x146   :  { %1275 = vpow2.f32 %v1055_v33  ;;  %v1252_v47 = vpop.eup %1251  ;;  %v595_v51 = vadd.f32 1.0, %v1250_v46  ;;  %v419_v63 = vadd.f32 %v418_v53, %v1508_v38  ;;  %v1071_v13 = vmul.f32 -1.442695, %v508_v49 }
 0x147   :  { %860 = vst [vmem:[#allocation12 + $0x20] sm:$0xff] %v857_v43  ;;  %v865_v48 = vmul.f32 %v1238_v19, %v857_v43  ;;  %1277 = vrcp.f32 %v594_v44  ;;  %v692_v60 = vadd.f32 1.0, %v1252_v47  ;;  %v1598_v4 = vpop.f32.mrf.mxu0  ;;  %v511_v19 = vadd.f32 %v510_v10, %v1510_v42 }
 0x148   :  { %v1254_v54 = vpop.eup %1253  ;;  %1279 = vtanh.f32 %v397_v39  ;;  %v1057_v18 = vmul.f32 -1.442695, %v419_v63 }
 0x149   :  { %v1256_v57 = vpop.eup %1255  ;;  %v751_v58 = vsub.f32 1.0, %v1254_v54  ;;  %868 = vst [vmem:[#allocation13 + $0x20] sm:$0xff] %v865_v48  ;;  %1281 = vrcp.f32 %v595_v51  ;;  %v853_v2 = vmul.f32 %v1254_v54, %v837_v24  ;;  %v422_v20 = vpop.f32.mrf.mxu0  ;;  %v1072_v39 = vmul.f32 -1.442695, %v511_v19 }
 0x14a   :  { %v1258_v59 = vpop.eup %1257  ;;  %1283 = vtanh.f32 %v401_v15  ;;  %v423_v33 = vadd.f32 %v422_v20, %v1508_v38  ;;  %v1074_v38 = vmul.f32 -1.442695, %v519_v32 }
 0x14b   :  { %v1260_v0 = vpop.eup %1259  ;;  %v767_v1 = vmul.f32 %v1561_v56, %v751_v58  ;;  %v690_v3 = vadd.f32 1.0, %v1258_v59  ;;  %1285 = vpow2.f32 %v1056_v52  ;;  %v411_v58 = vadd.f32 %v1576_v22, %v1513_v45 }
 0x14c   :  { %v1262_v6 = vpop.eup %1261  ;;  %v596_v8 = vadd.f32 1.0, %v1260_v0  ;;  %1287 = vtanh.f32 %v407_v28  ;;  %v1058_v42 = vmul.f32 -1.442695, %v423_v33 }
 0x14d   :  { %v1264_v62 = vpop.eup %1263  ;;  %v858_v12 = vadd.f32 %v853_v2, %v767_v1  ;;  %1289 = vrcp.f32 %v690_v3 }
 0x14e   :  { %v1266_v14 = vpop.eup %1265  ;;  %v752_v61 = vsub.f32 1.0, %v1264_v62  ;;  %1291 = vrcp.f32 %v596_v8  ;;  %v873_v24 = vmul.f32 %v1264_v62, %v857_v43 }
 0x14f   :  { %v1268_v17 = vpop.eup %1267  ;;  %861 = vst [vmem:[#allocation12 + $0x28] sm:$0xff] %v858_v12  ;;  %v866_v56 = vmul.f32 %v1256_v57, %v858_v12  ;;  %1293 = vrcp.f32 %v692_v60  ;;  %v693_v5 = vadd.f32 1.0, %v1266_v14 }
 0x150   :  { %v1270_v21 = vpop.eup %1269  ;;  %v768_v23 = vmul.f32 %v1572_v16, %v752_v61  ;;  %v691_v25 = vadd.f32 1.0, %v1268_v17  ;;  %1295 = vpow2.f32 %v1073_v9  ;;  %v417_v17 = vadd.f32 %v1584_v37, %v1513_v45 }
 0x151   :  { %v1272_v26 = vpop.eup %1271  ;;  %869 = vst [vmem:[#allocation13 + $0x28] sm:$0xff] %v866_v56  ;;  %v597_v29 = vadd.f32 1.0, %v1270_v21  ;;  %1297 = vpow2.f32 %v1071_v13  ;;  %v421_v37 = vadd.f32 %v1598_v4, %v1513_v45 }
 0x152   :  { %v1274_v30 = vpop.eup %1273  ;;  %v878_v31 = vadd.f32 %v873_v24, %v768_v23  ;;  %1299 = vrcp.f32 %v691_v25 }
 0x153   :  { %v1276_v34 = vpop.eup %1275  ;;  %v753_v35 = vsub.f32 1.0, %v1274_v30  ;;  %1301 = vrcp.f32 %v597_v29  ;;  %v874_v44 = vmul.f32 %v1274_v30, %v858_v12 }
 0x154   :  { %v1278_v36 = vpop.eup %1277  ;;  %881 = vst [vmem:[#allocation12 + $0x30] sm:$0xff] %v878_v31  ;;  %v886_v16 = vmul.f32 %v1570_v7, %v878_v31  ;;  %v598_v11 = vadd.f32 1.0, %v1276_v34  ;;  %1303 = vpow2.f32 %v1057_v18 }
 0x155   :  { %v1280_v40 = vpop.eup %1279  ;;  %v769_v43 = vmul.f32 %v1588_v41, %v753_v35  ;;  %v754_v46 = vsub.f32 1.0, %v1278_v36  ;;  %1305 = vrcp.f32 %v693_v5  ;;  %v894_v52 = vmul.f32 %v1278_v36, %v878_v31 }
 0x156   :  { %v1282_v15 = vpop.eup %1281  ;;  %889 = vst [vmem:[#allocation13 + $0x30] sm:$0xff] %v886_v16  ;;  %1307 = vrcp.f32 %v598_v11 }
 0x157   :  { %v1284_v47 = vpop.eup %1283  ;;  %v879_v48 = vadd.f32 %v874_v44, %v769_v43  ;;  %v770_v51 = vmul.f32 %v1262_v6, %v754_v46  ;;  %v755_v53 = vsub.f32 1.0, %v1282_v15  ;;  %1309 = vpow2.f32 %v1072_v39 }
 0x158   :  { %v1286_v7 = vpop.eup %1285  ;;  %1311 = vpow2.f32 %v1058_v42 }
 0x159   :  { %v1288_v54 = vpop.eup %1287  ;;  %882 = vst [vmem:[#allocation12 + $0x38] sm:$0xff] %v879_v48  ;;  %v887_v28 = vmul.f32 %v1580_v27, %v879_v48  ;;  %v899_v41 = vadd.f32 %v894_v52, %v770_v51  ;;  %v771_v55 = vmul.f32 %v1272_v26, %v755_v53  ;;  %v895_v50 = vmul.f32 %v1282_v15, %v879_v48 }
 0x15a   :  { %v1290_v57 = vpop.eup %1289  ;;  %v599_v49 = vadd.f32 1.0, %v1286_v7  ;;  %1313 = vpow2.f32 %v1074_v38 }
 0x15b   :  { %v1292_v59 = vpop.eup %1291  ;;  %890 = vst [vmem:[#allocation13 + $0x38] sm:$0xff] %v887_v28  ;;  %902 = vst [vmem:[#allocation12 + $0x40] sm:$0xff] %v899_v41  ;;  %v900_v60 = vadd.f32 %v895_v50, %v771_v55  ;;  %v907_v63 = vmul.f32 %v1290_v57, %v899_v41 }
 0x15c   :  { %v1294_v0 = vpop.eup %1293  ;;  %v756_v1 = vsub.f32 1.0, %v1292_v59  ;;  %1315 = vrcp.f32 %v599_v49  ;;  %v915_v6 = vmul.f32 %v1292_v59, %v899_v41 }
 0x15d   :  { %v1296_v2 = vpop.eup %1295  ;;  %903 = vst [vmem:[#allocation12 + $0x48] sm:$0xff] %v900_v60  ;;  %910 = vst [vmem:[#allocation13 + $0x40] sm:$0xff] %v907_v63  ;;  %1317 = vtanh.f32 %v411_v58 }
 0x15e   :  { %v1298_v27 = vpop.eup %1297  ;;  %v772_v3 = vmul.f32 %v1280_v40, %v756_v1  ;;  %v696_v25 = vadd.f32 1.0, %v1296_v2 }
 0x15f   :  { %v1300_v8 = vpop.eup %1299  ;;  %v694_v22 = vadd.f32 1.0, %v1298_v27 }
 0x160   :  { %v1302_v9 = vpop.eup %1301  ;;  %v920_v10 = vadd.f32 %v915_v6, %v772_v3  ;;  %v908_v62 = vmul.f32 %v1300_v8, %v900_v60 }
 0x161   :  { %v1304_v12 = vpop.eup %1303  ;;  %v757_v13 = vsub.f32 1.0, %v1302_v9  ;;  %1319 = vrcp.f32 %v694_v22  ;;  %v916_v20 = vmul.f32 %v1302_v9, %v900_v60 }
 0x162   :  { %v1306_v14 = vpop.eup %1305  ;;  %923 = vst [vmem:[#allocation12 + $0x50] sm:$0xff] %v920_v10  ;;  %v928_v61 = vmul.f32 %v1294_v0, %v920_v10  ;;  %911 = vst [vmem:[#allocation13 + $0x48] sm:$0xff] %v908_v62  ;;  %v600_v56 = vadd.f32 1.0, %v1304_v12 }
 0x163   :  { %v1308_v18 = vpop.eup %1307  ;;  %v773_v19 = vmul.f32 %v1284_v47, %v757_v13 }
 0x164   :  { %931 = vst [vmem:[#allocation13 + $0x50] sm:$0xff] %v928_v61  ;;  %v758_v21 = vsub.f32 1.0, %v1308_v18  ;;  %1321 = vrcp.f32 %v600_v56  ;;  %v1310_v23 = vpop.eup %1309  ;;  %v936_v5 = vmul.f32 %v1308_v18, %v920_v10 }
 0x165   :  { %v921_v24 = vadd.f32 %v916_v20, %v773_v19  ;;  %1323 = vtanh.f32 %v417_v17  ;;  %v695_v29 = vadd.f32 1.0, %v1310_v23  ;;  %v1312_v30 = vpop.eup %1311 }
 0x166   :  { %v774_v26 = vmul.f32 %v1288_v54, %v758_v21  ;;  %v601_v34 = vadd.f32 1.0, %v1312_v30 }
 0x167   :  { %924 = vst [vmem:[#allocation12 + $0x58] sm:$0xff] %v921_v24  ;;  %v929_v31 = vmul.f32 %v1306_v14, %v921_v24  ;;  %v1314_v32 = vpop.eup %1313  ;;  %1325 = vrcp.f32 %v695_v29 }
 0x168   :  { %v941_v33 = vadd.f32 %v936_v5, %v774_v26  ;;  %1327 = vrcp.f32 %v696_v25  ;;  %v697_v40 = vadd.f32 1.0, %v1314_v32 }
 0x169   :  { %v1316_v35 = vpop.eup %1315  ;;  %932 = vst [vmem:[#allocation13 + $0x58] sm:$0xff] %v929_v31  ;;  %1329 = vrcp.f32 %v601_v34 }
 0x16a   :  { %944 = vst [vmem:[#allocation12 + $0x60] sm:$0xff] %v941_v33  ;;  %v759_v36 = vsub.f32 1.0, %v1316_v35  ;;  %v1318_v16 = vpop.eup %1317  ;;  %v937_v39 = vmul.f32 %v1316_v35, %v921_v24  ;;  %1331 = vtanh.f32 %v421_v37 }
 0x16b   :  { %1333 = vrcp.f32 %v697_v40 }
 0x16c   :  { %v775_v11 = vmul.f32 %v1318_v16, %v759_v36 }
 0x16e   :  { %v1320_v43 = vpop.eup %1319  ;;  %v942_v44 = vadd.f32 %v937_v39, %v775_v11 }
 0x16f   :  { %v949_v46 = vmul.f32 %v1320_v43, %v941_v33 }
 0x170   :  { %945 = vst [vmem:[#allocation12 + $0x68] sm:$0xff] %v942_v44 }
 0x171   :  { %v1322_v15 = vpop.eup %1321  ;;  %952 = vst [vmem:[#allocation13 + $0x60] sm:$0xff] %v949_v46 }
 0x172   :  { %v760_v45 = vsub.f32 1.0, %v1322_v15  ;;  %v1324_v4 = vpop.eup %1323  ;;  %v957_v42 = vmul.f32 %v1322_v15, %v941_v33 }
 0x174   :  { %v776_v38 = vmul.f32 %v1324_v4, %v760_v45  ;;  %v1326_v47 = vpop.eup %1325 }
 0x175   :  { %v1328_v48 = vpop.eup %1327  ;;  %v950_v52 = vmul.f32 %v1326_v47, %v942_v44 }
 0x176   :  { %v962_v51 = vadd.f32 %v957_v42, %v776_v38  ;;  %v1330_v53 = vpop.eup %1329 }
 0x177   :  { %953 = vst [vmem:[#allocation13 + $0x68] sm:$0xff] %v950_v52  ;;  %v761_v54 = vsub.f32 1.0, %v1330_v53  ;;  %v1332_v28 = vpop.eup %1331  ;;  %v958_v55 = vmul.f32 %v1330_v53, %v942_v44 }
 0x178   :  { %965 = vst [vmem:[#allocation12 + $0x70] sm:$0xff] %v962_v51  ;;  %v970_v7 = vmul.f32 %v1328_v48, %v962_v51  ;;  %v1334_v57 = vpop.eup %1333 }
 0x179   :  { %v777_v41 = vmul.f32 %v1332_v28, %v761_v54 }
 0x17a   :  { %973 = vst [vmem:[#allocation13 + $0x70] sm:$0xff] %v970_v7 }
 0x17b   :  { %v963_v50 = vadd.f32 %v958_v55, %v777_v41 }
 0x17d   :  { %966 = vst [vmem:[#allocation12 + $0x78] sm:$0xff] %v963_v50  ;;  %v971_v58 = vmul.f32 %v1334_v57, %v963_v50 }
 0x17e   :  { %1406 = shalt.err (!%p1403_p5)
}
 0x17f   :  { %988 = dma.vmem_to_hbm [thread:$0]  %s983_s13, 2048, %s1629_s4, [#allocation8], %s1450_s9, %s1450_s9, %s1451_s10   ;;  %974 = vst [vmem:[#allocation13 + $0x78] sm:$0xff] %v971_v58 }
 0x180   :  { %s1415_s19 = scalar_lea.vmem %s995_s15, 2048  ;;  %p1420_p7 = scmp.lt.s32.totalorder %s995_s15, %s995_s15 }
 0x181   :  { %p1416_p6 = scmp.ne.s32.totalorder %s995_s15, %s1415_s19  ;;  %p1421_p8 = scmp.lt.s32.totalorder %s1415_s19, %s1415_s19 }
 0x183   :  { %p1422_p9 = por %p1421_p8, %p1420_p7 }
 0x185   :  { %p1423_p10 = pnand %p1422_p9, %p1416_p6 }
 0x187   :  { %1426 = shalt.err (!%p1423_p10)
}
 0x188   :  { %1000 = dma.vmem_to_hbm [thread:$0]  %s995_s15, 2048, %s1630_s5, [#allocation14], %s1450_s9, %s1450_s9, %s1451_s10  }
 0x189   :  { %1439 = dma.done.wait [#allocation8], 2048  }
 0x18a   :  { %1440 = vsyncadd [#allocation8], 4294965248 }
 0x18b   :  { %1441 = dma.done.wait [#allocation14], 2048  }
 0x18c   :  { %1442 = vsyncadd [#allocation14], 4294965248 }
 0x18d   :  { %1007 = vsyncpa [#allocation7], 1 }
 0x18e   :  { %1008 = vsyncpa [#allocation10], 1 }
 0x18f   :  { %1009 = vsyncpa [#allocation8], 1 }
 0x190   :  { %1010 = vsyncpa [#allocation14], 1 }

</bundles_post_ra>
